<compile_context>
chip_gen: v5e
topology: v5e:2x2
jax: 0.10.0
libtpu: 0.0.40
codegen_flags: <defaults>
</compile_context>

<pallas_src>
import functools

import jax
import jax.numpy as jnp
from jax.experimental import pallas as pl
from jax.experimental.pallas import tpu as pltpu

EPS_STAT = 1e-12      # self.eps in AttentiveStatisticsPooling
EPS_BN = 1e-5         # nn.BatchNorm1d default eps
_NEG_LARGE = -1e30    # finite -inf substitute for the masked softmax max

# TODO(synk): BatchNorm1d is evaluated in inference mode (running stats); training
# mode would need cross-batch statistics this per-example grid cannot express.
# TODO(synk): an all-masked example returns zeros for mean/std instead of the
# NaNs the PyTorch reference would produce (softmax over an empty set).


def _asp_kernel(x_ref, mask_ref, w1x_ref, w1m_ref, w1s_ref, b1_ref, w2_ref, b2_ref,
                out_ref,
                gsum_ref, gsq_ref, cnt_ref, meang_ref, bias_ref,
                mrun_ref, lrun_ref, s1_ref, s2_ref):
    """grid = (example, phase, L tile); phase 0 = global stats, phase 1 = attention."""
    phase = pl.program_id(1)
    li = pl.program_id(2)
    nl = pl.num_programs(2)

    # ---------------- phase 0: masked global mean/std over L ----------------
    @pl.when((phase == 0) & (li == 0))
    def _init_global():
        gsum_ref[...] = jnp.zeros_like(gsum_ref)
        gsq_ref[...] = jnp.zeros_like(gsq_ref)
        cnt_ref[...] = jnp.zeros_like(cnt_ref)

    @pl.when(phase == 0)
    def _accumulate_global():
        x = x_ref[0].astype(jnp.float32)        # [C, lt]
        mk = mask_ref[0].astype(jnp.float32)    # [1, lt]
        xm = x * mk
        # Lane-axis reductions stay on the VPU/XLU; the MXU is reserved for the convs.
        gsum_ref[...] += jnp.sum(xm, axis=-1, keepdims=True)
        gsq_ref[...] += jnp.sum(xm * x, axis=-1, keepdims=True)
        cnt_ref[...] += jnp.sum(mk, axis=-1, keepdims=True)

    @pl.when((phase == 0) & (li == nl - 1))
    def _finalize_global():
        inv_cnt = 1.0 / jnp.maximum(cnt_ref[...], 1.0)           # all-zero-mask guard
        mean_g = gsum_ref[...] * inv_cnt                         # [C, 1]
        var_g = gsq_ref[...] * inv_cnt - mean_g * mean_g
        std_g = jnp.sqrt(jnp.maximum(var_g, EPS_STAT))           # [C, 1]
        meang_ref[...] = mean_g
        # Global-context contribution of the decomposed k=1 conv: a column bias.
        bias_ref[...] = (
            jnp.dot(w1m_ref[...], mean_g, preferred_element_type=jnp.float32)
            + jnp.dot(w1s_ref[...], std_g, preferred_element_type=jnp.float32)
            + b1_ref[...])                                       # [A, 1]
        # Init the online-softmax / attentive-statistics running state.
        mrun_ref[...] = jnp.full(mrun_ref.shape, _NEG_LARGE, jnp.float32)
        lrun_ref[...] = jnp.zeros_like(lrun_ref)
        s1_ref[...] = jnp.zeros_like(s1_ref)
        s2_ref[...] = jnp.zeros_like(s2_ref)

    # ------------- phase 1: attention scores + online masked softmax -------------
    @pl.when(phase == 1)
    def _attend():
        x_in = x_ref[0]                                          # [C, lt] native dtype (MXU operand)
        x32 = x_in.astype(jnp.float32)
        mk = mask_ref[0].astype(jnp.float32)                     # [1, lt]

        # TDNNBlock conv (k=1, BN folded): h = W1x @ x + bias_col; ReLU -> tanh.
        h = jnp.dot(w1x_ref[...], x_in,
                    preferred_element_type=jnp.float32) + bias_ref[...]   # [A, lt]
        h = jnp.tanh(jnp.maximum(h, 0.0))
        scores = (jnp.dot(w2_ref[...], h.astype(w2_ref.dtype),
                          preferred_element_type=jnp.float32)
                  + b2_ref[...])                                 # [C, lt]

        # Masked online softmax fused with the attentive statistics.
        sm = jnp.where(mk > 0.0, scores, _NEG_LARGE)             # finite floor (no -inf NaNs)
        m_prev = mrun_ref[...]                                   # [C, 1]
        m_new = jnp.maximum(m_prev, jnp.max(sm, axis=-1, keepdims=True))
        alpha = jnp.exp(m_prev - m_new)
        p = jnp.exp(sm - m_new) * mk                             # exactly 0 at masked positions
        xc = x32 - meang_ref[...]                                # center -> stable variance
        pxc = p * xc
        lrun_ref[...] = alpha * lrun_ref[...] + jnp.sum(p, axis=-1, keepdims=True)
        s1_ref[...] = alpha * s1_ref[...] + jnp.sum(pxc, axis=-1, keepdims=True)
        s2_ref[...] = alpha * s2_ref[...] + jnp.sum(pxc * xc, axis=-1, keepdims=True)
        mrun_ref[...] = m_new

    @pl.when((phase == 1) & (li == nl - 1))
    def _finalize_output():
        inv_l = 1.0 / jnp.maximum(lrun_ref[...], 1e-30)          # all-masked row -> zeros
        mean_c = s1_ref[...] * inv_l                             # [C, 1] (centered)
        mean = mean_c + meang_ref[...]
        var = s2_ref[...] * inv_l - mean_c * mean_c
        std = jnp.sqrt(jnp.maximum(var, EPS_STAT))
        stats = jnp.concatenate([mean, std], axis=1)             # [C, 2]
        out_ref[0] = jnp.transpose(stats).astype(out_ref.dtype)  # lane-dense [2, C]


def _hw_vmem_bytes():
    """Physical VMEM per core (hardware-aware cap, per review); conservative fallback."""
    try:
        info = pltpu.get_tpu_info()
        v = getattr(info, "vmem_capacity_bytes", None)
        if v:
            return int(v)
    except Exception:
        pass
    return 64 << 20  # v7x-sized conservative default


def _pick_l_tile(c, a, l, itemsize, vmem_cap):
    """Largest multiple-of-128 L tile dividing L whose working set fits comfortably."""
    if l % 128 != 0:
        return l  # (8,128) layout constraint: cannot tile a non-multiple-of-128 L
    cands = [k for k in range(128, l + 1, 128) if l % k == 0]
    # bytes per L column: f32 temps (x, xm/xc, p, pxc, scores, h, ...) + pipelined x
    col_bytes = c * (6 * 4 + 2 * itemsize) + a * 3 * 4
    budget = int(vmem_cap * 0.4)
    fitting = [k for k in cands if k * col_bytes <= budget]
    return max(fitting) if fitting else cands[0]


def _const_spec(shape):
    """BlockSpec for a grid-invariant operand; single-buffered when supported."""
    idx = lambda i, p, j: (0,) * len(shape)
    buffered = getattr(pl, "Buffered", None)
    if buffered is not None:
        try:
            return pl.BlockSpec(shape, idx, pipeline_mode=buffered(1))
        except (TypeError, ValueError):
            pass
    return pl.BlockSpec(shape, idx)


def _make_mask(lengths, N, L):
    if lengths is None:
        lengths = jnp.ones((N,), jnp.float32)
    lens = jnp.round(lengths * L)
    mask = (jnp.arange(L)[None, :] < lens[:, None]).astype(jnp.float32)
    return mask[:, None, :]  # [N, 1, L]


@functools.partial(jax.jit, static_argnames=("l_tile",))
def attentive_statistics_pooling(x, mask, params, *, l_tile=None):
    """x: [N, C, L], mask: [N, 1, L] -> [N, 2C, 1] (mean ++ std), PyTorch layout."""
    N, C, L = x.shape
    A = params["w1"].shape[0]

    # ---- fold BatchNorm1d (inference) into the first k=1 conv (wrapper-side) ----
    scale = params["gamma"] * jax.lax.rsqrt(params["rv"] + EPS_BN)        # [A, 1]
    w1p = params["w1"] * scale                                            # [A, 3C]
    b1p = ((params["b1"] - params["rm"]) * scale + params["beta"]).astype(jnp.float32)
    w1x = w1p[:, :C].astype(x.dtype)             # MXU operand stays in the input dtype
    w1m = w1p[:, C:2 * C].astype(jnp.float32)    # stats path stays f32
    w1s = w1p[:, 2 * C:].astype(jnp.float32)
    w2 = params["w2"].astype(x.dtype)
    b2 = params["b2"].astype(jnp.float32)

    vmem_cap = _hw_vmem_bytes()
    itemsize = jnp.dtype(x.dtype).itemsize
    lt = _pick_l_tile(C, A, L, itemsize, vmem_cap) if l_tile is None else int(l_tile)
    assert L % lt == 0 and (lt == L or lt % 128 == 0), "invalid l_tile"
    nl = L // lt

    # VMEM budget: pipelined x/mask windows + single-buffered weights + lane-padded
    # per-example scratch + in-kernel [C,lt]/[A,lt] f32 temps; capped by hardware.
    pad8 = lambda v: -(-v // 8) * 8
    scratch_bytes = 4 * (7 * pad8(C) * 128 + pad8(A) * 128 + 8 * 128)
    weight_bytes = 2 * A * C * 4 + 2 * A * C * itemsize + (A + C) * 128 * 4
    est = (2 * (C * lt * itemsize + lt * 4 + 2 * C * itemsize)
           + weight_bytes + scratch_bytes
           + 4 * lt * (8 * C + 3 * A) + (4 << 20))
    vmem_limit = int(min(max(est, 16 << 20), (vmem_cap * 3) // 4))

    grid_spec = pltpu.PrefetchScalarGridSpec(
        num_scalar_prefetch=0,
        grid=(N, 2, nl),
        in_specs=[
            pl.BlockSpec((1, C, lt), lambda i, p, j: (i, 0, j)),   # x
            pl.BlockSpec((1, 1, lt), lambda i, p, j: (i, 0, j)),   # mask
            _const_spec((A, C)),    # w1 | x block   (BN folded)
            _const_spec((A, C)),    # w1 | mean block
            _const_spec((A, C)),    # w1 | std block
            _const_spec((A, 1)),    # folded bias b1'
            _const_spec((C, A)),    # w2
            _const_spec((C, 1)),    # b2
        ],
        out_specs=pl.BlockSpec((1, 2, C), lambda i, p, j: (i, 0, 0)),  # lane-dense stats
        scratch_shapes=[
            pltpu.VMEM((C, 1), jnp.float32),   # sum(mask*x)
            pltpu.VMEM((C, 1), jnp.float32),   # sum(mask*x^2)
            pltpu.VMEM((1, 1), jnp.float32),   # sum(mask)
            pltpu.VMEM((C, 1), jnp.float32),   # global mean
            pltpu.VMEM((A, 1), jnp.float32),   # folded column bias for conv1
            pltpu.VMEM((C, 1), jnp.float32),   # running max
            pltpu.VMEM((C, 1), jnp.float32),   # running sum exp
            pltpu.VMEM((C, 1), jnp.float32),   # running sum p*(x-mean_g)
            pltpu.VMEM((C, 1), jnp.float32),   # running sum p*(x-mean_g)^2
        ],
    )

    out = pl.pallas_call(
        _asp_kernel,
        out_shape=jax.ShapeDtypeStruct((N, 2, C), x.dtype),
        grid_spec=grid_spec,
        compiler_params=pltpu.CompilerParams(
            dimension_semantics=("parallel", "arbitrary", "arbitrary"),
            vmem_limit_bytes=vmem_limit),
    )(x, mask, w1x, w1m, w1s, b1p, w2, b2)

    # [N, 2, C] -> [N, 2C, 1]: first C channels are mean, next C are std.
    return out.reshape(N, 2 * C, 1)


def asp_reference(x, mask, params):
    """Pure-JAX reference mirroring the PyTorch forward (inference-mode BN)."""
    N, C, L = x.shape
    total = mask.sum(axis=2, keepdims=True)
    w = mask / total
    mean = (w * x).sum(2)
    std = jnp.sqrt(jnp.clip((w * (x - mean[:, :, None]) ** 2).sum(2), EPS_STAT))
    attn_in = jnp.concatenate(
        [x, jnp.repeat(mean[:, :, None], L, 2), jnp.repeat(std[:, :, None], L, 2)],
        axis=1)
    h = jnp.einsum("ac,ncl->nal", params["w1"], attn_in) + params["b1"][None]
    h = (h - params["rm"][None]) / jnp.sqrt(params["rv"][None] + EPS_BN)
    h = h * params["gamma"][None] + params["beta"][None]
    h = jnp.tanh(jnp.maximum(h, 0.0))
    scores = jnp.einsum("ca,nal->ncl", params["w2"], h) + params["b2"][None]
    scores = jnp.where(mask > 0, scores, -jnp.inf)
    attn = jax.nn.softmax(scores, axis=2)
    mean2 = (attn * x).sum(2)
    std2 = jnp.sqrt(jnp.clip((attn * (x - mean2[:, :, None]) ** 2).sum(2), EPS_STAT))
    return jnp.concatenate([mean2, std2], axis=1)[:, :, None]


def init_params(key, channels, attention_channels):
    C, A = channels, attention_channels
    k1, k2, k3, k4 = jax.random.split(key, 4)
    return {
        # Conv1d(3C -> A, k=1): weight [A, 3C, 1] squeezed to [A, 3C]
        "w1": 0.1 * jax.random.normal(k1, (A, 3 * C), jnp.float32),
        "b1": 0.1 * jax.random.normal(k2, (A, 1), jnp.float32),
        # BatchNorm1d(A) default init (inference mode)
        "gamma": jnp.ones((A, 1), jnp.float32),
        "beta": jnp.zeros((A, 1), jnp.float32),
        "rm": jnp.zeros((A, 1), jnp.float32),
        "rv": jnp.ones((A, 1), jnp.float32),
        # Conv1d(A -> C, k=1): weight [C, A, 1] squeezed to [C, A]
        "w2": 0.1 * jax.random.normal(k3, (C, A), jnp.float32),
        "b2": 0.1 * jax.random.normal(k4, (C, 1), jnp.float32),
    }


if __name__ == "__main__":
    key = jax.random.PRNGKey(0)
    kx, kp, kl = jax.random.split(key, 3)

    # ---- case 1/2: small shapes, single L tile (L not a multiple of 128) ----
    N, C, L, A = 4, 8, 16, 32
    x = jax.random.normal(kx, (N, C, L), jnp.float32)
    params = init_params(kp, C, A)

    mask_full = _make_mask(None, N, L)
    out1 = attentive_statistics_pooling(x, mask_full, params)
    jax.block_until_ready(out1)
    ref1 = asp_reference(x, mask_full, params)

    lengths = jnp.array([1.0, 0.75, 0.5, 0.25], jnp.float32)
    mask_part = _make_mask(lengths, N, L)
    out2 = attentive_statistics_pooling(x, mask_part, params)
    jax.block_until_ready(out2)
    ref2 = asp_reference(x, mask_part, params)

    # ---- case 3: L-tiled online-softmax path (forced l_tile=128, 2 L tiles) ----
    N2, C2, L2, A2 = 2, 8, 256, 16
    k2x, k2p = jax.random.split(kl)
    x2 = jax.random.normal(k2x, (N2, C2, L2), jnp.float32)
    params2 = init_params(k2p, C2, A2)
    lengths2 = jnp.array([1.0, 0.6], jnp.float32)
    mask2 = _make_mask(lengths2, N2, L2)
    out3 = attentive_statistics_pooling(x2, mask2, params2, l_tile=128)
    jax.block_until_ready(out3)
    ref3 = asp_reference(x2, mask2, params2)

    assert out1.shape == (N, 2 * C, 1)
    assert out3.shape == (N2, 2 * C2, 1)
    assert jnp.allclose(out1, ref1, rtol=2e-4, atol=2e-4)
    assert jnp.allclose(out2, ref2, rtol=2e-4, atol=2e-4)
    assert jnp.allclose(out3, ref3, rtol=2e-4, atol=2e-4)
    print("KERNEL_OK")
</pallas_src>

<mosaic_0001>
module attributes {stable_mosaic.version = 11 : i64} {
  func.func @_asp_kernel(%arg0: i32, %arg1: i32, %arg2: i32, %arg3: memref<1x8x16xf32, #tpu.memory_space<vmem>>, %arg4: memref<1x1x16xf32, #tpu.memory_space<vmem>>, %arg5: memref<32x8xf32, #tpu.memory_space<vmem>>, %arg6: memref<32x8xf32, #tpu.memory_space<vmem>>, %arg7: memref<32x8xf32, #tpu.memory_space<vmem>>, %arg8: memref<32x1xf32, #tpu.memory_space<vmem>>, %arg9: memref<8x32xf32, #tpu.memory_space<vmem>>, %arg10: memref<8x1xf32, #tpu.memory_space<vmem>>, %arg11: memref<1x2x8xf32, #tpu.memory_space<vmem>>, %arg12: memref<8x1xf32, #tpu.memory_space<vmem>>, %arg13: memref<8x1xf32, #tpu.memory_space<vmem>>, %arg14: memref<1x1xf32, #tpu.memory_space<vmem>>, %arg15: memref<8x1xf32, #tpu.memory_space<vmem>>, %arg16: memref<32x1xf32, #tpu.memory_space<vmem>>, %arg17: memref<8x1xf32, #tpu.memory_space<vmem>>, %arg18: memref<8x1xf32, #tpu.memory_space<vmem>>, %arg19: memref<8x1xf32, #tpu.memory_space<vmem>>, %arg20: memref<8x1xf32, #tpu.memory_space<vmem>>) attributes {dimension_semantics = [#tpu.dimension_semantics<parallel>, #tpu.dimension_semantics<arbitrary>, #tpu.dimension_semantics<arbitrary>], iteration_bounds = array<i64: 4, 2, 1>, scalar_prefetch = 0 : i64, scratch_operands = 9 : i64, tpu.core_type = #tpu.core_type<tc>, window_params = [{transform_indices = @transform_0, window_bounds = array<i64: 1, 8, 16>}, {transform_indices = @transform_1, window_bounds = array<i64: 1, 1, 16>}, {pipeline_mode = #tpu.pipeline_mode<synchronous>, transform_indices = @transform_2, window_bounds = array<i64: 32, 8>}, {pipeline_mode = #tpu.pipeline_mode<synchronous>, transform_indices = @transform_3, window_bounds = array<i64: 32, 8>}, {pipeline_mode = #tpu.pipeline_mode<synchronous>, transform_indices = @transform_4, window_bounds = array<i64: 32, 8>}, {pipeline_mode = #tpu.pipeline_mode<synchronous>, transform_indices = @transform_5, window_bounds = array<i64: 32, 1>}, {pipeline_mode = #tpu.pipeline_mode<synchronous>, transform_indices = @transform_6, window_bounds = array<i64: 8, 32>}, {pipeline_mode = #tpu.pipeline_mode<synchronous>, transform_indices = @transform_7, window_bounds = array<i64: 8, 1>}, {transform_indices = @transform_8, window_bounds = array<i64: 1, 2, 8>}]} {
    %c0_i32 = arith.constant 0 : i32
    %0 = arith.cmpi eq, %arg1, %c0_i32 : i32
    %c0_i32_0 = arith.constant 0 : i32
    %1 = arith.cmpi eq, %arg2, %c0_i32_0 : i32
    %2 = arith.andi %0, %1 : i1
    %3 = arith.extui %2 : i1 to i32
    %c0_i32_1 = arith.constant 0 : i32
    %4 = arith.cmpi ne, %3, %c0_i32_1 : i32
    scf.if %4 {
      %cst = arith.constant 0.000000e+00 : f32
      %21 = vector.broadcast %cst : f32 to vector<8x1xf32>
      %c0 = arith.constant 0 : index
      %c0_11 = arith.constant 0 : index
      %22 = vector.load %arg12[%c0, %c0_11] : memref<8x1xf32, #tpu.memory_space<vmem>>, vector<8x1xf32>
      tpu.vector_store %arg12[%c0, %c0_11], %21 {strides = array<i32>} : memref<8x1xf32, #tpu.memory_space<vmem>>, vector<8x1xf32>,
      %cst_12 = arith.constant 0.000000e+00 : f32
      %23 = vector.broadcast %cst_12 : f32 to vector<8x1xf32>
      %c0_13 = arith.constant 0 : index
      %c0_14 = arith.constant 0 : index
      %24 = vector.load %arg13[%c0_13, %c0_14] : memref<8x1xf32, #tpu.memory_space<vmem>>, vector<8x1xf32>
      tpu.vector_store %arg13[%c0_13, %c0_14], %23 {strides = array<i32>} : memref<8x1xf32, #tpu.memory_space<vmem>>, vector<8x1xf32>,
      %cst_15 = arith.constant 0.000000e+00 : f32
      %25 = vector.broadcast %cst_15 : f32 to vector<1x1xf32>
      %c0_16 = arith.constant 0 : index
      %c0_17 = arith.constant 0 : index
      %26 = vector.load %arg14[%c0_16, %c0_17] : memref<1x1xf32, #tpu.memory_space<vmem>>, vector<1x1xf32>
      tpu.vector_store %arg14[%c0_16, %c0_17], %25 {strides = array<i32>} : memref<1x1xf32, #tpu.memory_space<vmem>>, vector<1x1xf32>,
    } else {
    }
    %c0_i32_2 = arith.constant 0 : i32
    %5 = arith.cmpi eq, %arg1, %c0_i32_2 : i32
    %6 = arith.extui %5 : i1 to i32
    %c0_i32_3 = arith.constant 0 : i32
    %7 = arith.cmpi ne, %6, %c0_i32_3 : i32
    scf.if %7 {
      %c0 = arith.constant 0 : index
      %c0_11 = arith.constant 0 : index
      %c0_12 = arith.constant 0 : index
      %21 = vector.load %arg3[%c0, %c0_11, %c0_12] : memref<1x8x16xf32, #tpu.memory_space<vmem>>, vector<1x8x16xf32>
      %22 = vector.shape_cast %21 : vector<1x8x16xf32> to vector<8x16xf32>
      %c0_13 = arith.constant 0 : index
      %c0_14 = arith.constant 0 : index
      %c0_15 = arith.constant 0 : index
      %23 = vector.load %arg4[%c0_13, %c0_14, %c0_15] : memref<1x1x16xf32, #tpu.memory_space<vmem>>, vector<1x1x16xf32>
      %24 = vector.shape_cast %23 : vector<1x1x16xf32> to vector<1x16xf32>
      %25 = vector.broadcast %24 : vector<1x16xf32> to vector<8x16xf32>
      %26 = arith.mulf %22, %25 : vector<8x16xf32>
      %c0_16 = arith.constant 0 : index
      %c0_17 = arith.constant 0 : index
      %27 = vector.load %arg12[%c0_16, %c0_17] : memref<8x1xf32, #tpu.memory_space<vmem>>, vector<8x1xf32>
      %cst = arith.constant dense<0.000000e+00> : vector<8xf32>
      %28 = vector.multi_reduction <add>, %26, %cst [1] : vector<8x16xf32> to vector<8xf32>
      %29 = vector.shape_cast %28 : vector<8xf32> to vector<8x1xf32>
      %30 = arith.addf %27, %29 : vector<8x1xf32>
      %c0_18 = arith.constant 0 : index
      %c0_19 = arith.constant 0 : index
      %31 = vector.load %arg12[%c0_18, %c0_19] : memref<8x1xf32, #tpu.memory_space<vmem>>, vector<8x1xf32>
      tpu.vector_store %arg12[%c0_18, %c0_19], %30 {strides = array<i32>} : memref<8x1xf32, #tpu.memory_space<vmem>>, vector<8x1xf32>,
      %c0_20 = arith.constant 0 : index
      %c0_21 = arith.constant 0 : index
      %32 = vector.load %arg13[%c0_20, %c0_21] : memref<8x1xf32, #tpu.memory_space<vmem>>, vector<8x1xf32>
      %33 = arith.mulf %26, %22 : vector<8x16xf32>
      %cst_22 = arith.constant dense<0.000000e+00> : vector<8xf32>
      %34 = vector.multi_reduction <add>, %33, %cst_22 [1] : vector<8x16xf32> to vector<8xf32>
      %35 = vector.shape_cast %34 : vector<8xf32> to vector<8x1xf32>
      %36 = arith.addf %32, %35 : vector<8x1xf32>
      %c0_23 = arith.constant 0 : index
      %c0_24 = arith.constant 0 : index
      %37 = vector.load %arg13[%c0_23, %c0_24] : memref<8x1xf32, #tpu.memory_space<vmem>>, vector<8x1xf32>
      tpu.vector_store %arg13[%c0_23, %c0_24], %36 {strides = array<i32>} : memref<8x1xf32, #tpu.memory_space<vmem>>, vector<8x1xf32>,
      %c0_25 = arith.constant 0 : index
      %c0_26 = arith.constant 0 : index
      %38 = vector.load %arg14[%c0_25, %c0_26] : memref<1x1xf32, #tpu.memory_space<vmem>>, vector<1x1xf32>
      %cst_27 = arith.constant dense<0.000000e+00> : vector<1xf32>
      %39 = vector.multi_reduction <add>, %24, %cst_27 [1] : vector<1x16xf32> to vector<1xf32>
      %40 = vector.shape_cast %39 : vector<1xf32> to vector<1x1xf32>
      %41 = arith.addf %38, %40 : vector<1x1xf32>
      %c0_28 = arith.constant 0 : index
      %c0_29 = arith.constant 0 : index
      %42 = vector.load %arg14[%c0_28, %c0_29] : memref<1x1xf32, #tpu.memory_space<vmem>>, vector<1x1xf32>
      tpu.vector_store %arg14[%c0_28, %c0_29], %41 {strides = array<i32>} : memref<1x1xf32, #tpu.memory_space<vmem>>, vector<1x1xf32>,
    } else {
    }
    %c0_i32_4 = arith.constant 0 : i32
    %8 = arith.cmpi eq, %arg1, %c0_i32_4 : i32
    %c0_i32_5 = arith.constant 0 : i32
    %9 = arith.cmpi eq, %arg2, %c0_i32_5 : i32
    %10 = arith.andi %8, %9 : i1
    %11 = arith.extui %10 : i1 to i32
    %c0_i32_6 = arith.constant 0 : i32
    %12 = arith.cmpi ne, %11, %c0_i32_6 : i32
    scf.if %12 {
      %c0 = arith.constant 0 : index
      %c0_11 = arith.constant 0 : index
      %21 = vector.load %arg14[%c0, %c0_11] : memref<1x1xf32, #tpu.memory_space<vmem>>, vector<1x1xf32>
      %cst = arith.constant 1.000000e+00 : f32
      %22 = vector.broadcast %cst : f32 to vector<1x1xf32>
      %23 = arith.maximumf %21, %22 : vector<1x1xf32>
      %cst_12 = arith.constant 1.000000e+00 : f32
      %24 = vector.broadcast %cst_12 : f32 to vector<1x1xf32>
      %25 = arith.divf %24, %23 : vector<1x1xf32>
      %c0_13 = arith.constant 0 : index
      %c0_14 = arith.constant 0 : index
      %26 = vector.load %arg12[%c0_13, %c0_14] : memref<8x1xf32, #tpu.memory_space<vmem>>, vector<8x1xf32>
      %27 = vector.broadcast %25 : vector<1x1xf32> to vector<8x1xf32>
      %28 = arith.mulf %26, %27 : vector<8x1xf32>
      %c0_15 = arith.constant 0 : index
      %c0_16 = arith.constant 0 : index
      %29 = vector.load %arg13[%c0_15, %c0_16] : memref<8x1xf32, #tpu.memory_space<vmem>>, vector<8x1xf32>
      %30 = vector.broadcast %25 : vector<1x1xf32> to vector<8x1xf32>
      %31 = arith.mulf %29, %30 : vector<8x1xf32>
      %32 = arith.mulf %28, %28 : vector<8x1xf32>
      %33 = arith.subf %31, %32 : vector<8x1xf32>
      %cst_17 = arith.constant 9.99999996E-13 : f32
      %34 = vector.broadcast %cst_17 : f32 to vector<8x1xf32>
      %35 = arith.maximumf %33, %34 : vector<8x1xf32>
      %36 = math.sqrt %35 : vector<8x1xf32>
      %c0_18 = arith.constant 0 : index
      %c0_19 = arith.constant 0 : index
      %37 = vector.load %arg15[%c0_18, %c0_19] : memref<8x1xf32, #tpu.memory_space<vmem>>, vector<8x1xf32>
      tpu.vector_store %arg15[%c0_18, %c0_19], %28 {strides = array<i32>} : memref<8x1xf32, #tpu.memory_space<vmem>>, vector<8x1xf32>,
      %c0_20 = arith.constant 0 : index
      %c0_21 = arith.constant 0 : index
      %38 = vector.load %arg6[%c0_20, %c0_21] : memref<32x8xf32, #tpu.memory_space<vmem>>, vector<32x8xf32>
      %cst_22 = arith.constant dense<0.000000e+00> : vector<32x1xf32>
      %39 = tpu.matmul %38, %28, %cst_22 {dimension_numbers = #tpu.dot_dimension_numbers<[1], [0], [0], [1], [0, 0, 1, 1], [], []>} : vector<32x8xf32>, vector<8x1xf32>, vector<32x1xf32> -> vector<32x1xf32>
      %c0_23 = arith.constant 0 : index
      %c0_24 = arith.constant 0 : index
      %40 = vector.load %arg7[%c0_23, %c0_24] : memref<32x8xf32, #tpu.memory_space<vmem>>, vector<32x8xf32>
      %cst_25 = arith.constant dense<0.000000e+00> : vector<32x1xf32>
      %41 = tpu.matmul %40, %36, %cst_25 {dimension_numbers = #tpu.dot_dimension_numbers<[1], [0], [0], [1], [0, 0, 1, 1], [], []>} : vector<32x8xf32>, vector<8x1xf32>, vector<32x1xf32> -> vector<32x1xf32>
      %42 = arith.addf %39, %41 : vector<32x1xf32>
      %c0_26 = arith.constant 0 : index
      %c0_27 = arith.constant 0 : index
      %43 = vector.load %arg8[%c0_26, %c0_27] : memref<32x1xf32, #tpu.memory_space<vmem>>, vector<32x1xf32>
      %44 = arith.addf %42, %43 : vector<32x1xf32>
      %c0_28 = arith.constant 0 : index
      %c0_29 = arith.constant 0 : index
      %45 = vector.load %arg16[%c0_28, %c0_29] : memref<32x1xf32, #tpu.memory_space<vmem>>, vector<32x1xf32>
      tpu.vector_store %arg16[%c0_28, %c0_29], %44 {strides = array<i32>} : memref<32x1xf32, #tpu.memory_space<vmem>>, vector<32x1xf32>,
      %cst_30 = arith.constant -1.000000e+30 : f32
      %46 = vector.broadcast %cst_30 : f32 to vector<8x1xf32>
      %c0_31 = arith.constant 0 : index
      %c0_32 = arith.constant 0 : index
      %47 = vector.load %arg17[%c0_31, %c0_32] : memref<8x1xf32, #tpu.memory_space<vmem>>, vector<8x1xf32>
      tpu.vector_store %arg17[%c0_31, %c0_32], %46 {strides = array<i32>} : memref<8x1xf32, #tpu.memory_space<vmem>>, vector<8x1xf32>,
      %cst_33 = arith.constant 0.000000e+00 : f32
      %48 = vector.broadcast %cst_33 : f32 to vector<8x1xf32>
      %c0_34 = arith.constant 0 : index
      %c0_35 = arith.constant 0 : index
      %49 = vector.load %arg18[%c0_34, %c0_35] : memref<8x1xf32, #tpu.memory_space<vmem>>, vector<8x1xf32>
      tpu.vector_store %arg18[%c0_34, %c0_35], %48 {strides = array<i32>} : memref<8x1xf32, #tpu.memory_space<vmem>>, vector<8x1xf32>,
      %cst_36 = arith.constant 0.000000e+00 : f32
      %50 = vector.broadcast %cst_36 : f32 to vector<8x1xf32>
      %c0_37 = arith.constant 0 : index
      %c0_38 = arith.constant 0 : index
      %51 = vector.load %arg19[%c0_37, %c0_38] : memref<8x1xf32, #tpu.memory_space<vmem>>, vector<8x1xf32>
      tpu.vector_store %arg19[%c0_37, %c0_38], %50 {strides = array<i32>} : memref<8x1xf32, #tpu.memory_space<vmem>>, vector<8x1xf32>,
      %cst_39 = arith.constant 0.000000e+00 : f32
      %52 = vector.broadcast %cst_39 : f32 to vector<8x1xf32>
      %c0_40 = arith.constant 0 : index
      %c0_41 = arith.constant 0 : index
      %53 = vector.load %arg20[%c0_40, %c0_41] : memref<8x1xf32, #tpu.memory_space<vmem>>, vector<8x1xf32>
      tpu.vector_store %arg20[%c0_40, %c0_41], %52 {strides = array<i32>} : memref<8x1xf32, #tpu.memory_space<vmem>>, vector<8x1xf32>,
    } else {
    }
    %c1_i32 = arith.constant 1 : i32
    %13 = arith.cmpi eq, %arg1, %c1_i32 : i32
    %14 = arith.extui %13 : i1 to i32
    %c0_i32_7 = arith.constant 0 : i32
    %15 = arith.cmpi ne, %14, %c0_i32_7 : i32
    scf.if %15 {
      %c0 = arith.constant 0 : index
      %c0_11 = arith.constant 0 : index
      %c0_12 = arith.constant 0 : index
      %21 = vector.load %arg3[%c0, %c0_11, %c0_12] : memref<1x8x16xf32, #tpu.memory_space<vmem>>, vector<1x8x16xf32>
      %22 = vector.shape_cast %21 : vector<1x8x16xf32> to vector<8x16xf32>
      %c0_13 = arith.constant 0 : index
      %c0_14 = arith.constant 0 : index
      %c0_15 = arith.constant 0 : index
      %23 = vector.load %arg4[%c0_13, %c0_14, %c0_15] : memref<1x1x16xf32, #tpu.memory_space<vmem>>, vector<1x1x16xf32>
      %24 = vector.shape_cast %23 : vector<1x1x16xf32> to vector<1x16xf32>
      %c0_16 = arith.constant 0 : index
      %c0_17 = arith.constant 0 : index
      %25 = vector.load %arg5[%c0_16, %c0_17] : memref<32x8xf32, #tpu.memory_space<vmem>>, vector<32x8xf32>
      %cst = arith.constant dense<0.000000e+00> : vector<32x16xf32>
      %26 = tpu.matmul %25, %22, %cst {dimension_numbers = #tpu.dot_dimension_numbers<[1], [0], [0], [1], [0, 0, 1, 1], [], []>} : vector<32x8xf32>, vector<8x16xf32>, vector<32x16xf32> -> vector<32x16xf32>
      %c0_18 = arith.constant 0 : index
      %c0_19 = arith.constant 0 : index
      %27 = vector.load %arg16[%c0_18, %c0_19] : memref<32x1xf32, #tpu.memory_space<vmem>>, vector<32x1xf32>
      %28 = vector.broadcast %27 : vector<32x1xf32> to vector<32x16xf32>
      %29 = arith.addf %26, %28 : vector<32x16xf32>
      %cst_20 = arith.constant 0.000000e+00 : f32
      %30 = vector.broadcast %cst_20 : f32 to vector<32x16xf32>
      %31 = arith.maximumf %29, %30 : vector<32x16xf32>
      %32 = math.tanh %31 : vector<32x16xf32>
      %c0_21 = arith.constant 0 : index
      %c0_22 = arith.constant 0 : index
      %33 = vector.load %arg9[%c0_21, %c0_22] : memref<8x32xf32, #tpu.memory_space<vmem>>, vector<8x32xf32>
      %cst_23 = arith.constant dense<0.000000e+00> : vector<8x16xf32>
      %34 = tpu.matmul %33, %32, %cst_23 {dimension_numbers = #tpu.dot_dimension_numbers<[1], [0], [0], [1], [0, 0, 1, 1], [], []>} : vector<8x32xf32>, vector<32x16xf32>, vector<8x16xf32> -> vector<8x16xf32>
      %c0_24 = arith.constant 0 : index
      %c0_25 = arith.constant 0 : index
      %35 = vector.load %arg10[%c0_24, %c0_25] : memref<8x1xf32, #tpu.memory_space<vmem>>, vector<8x1xf32>
      %36 = vector.broadcast %35 : vector<8x1xf32> to vector<8x16xf32>
      %37 = arith.addf %34, %36 : vector<8x16xf32>
      %cst_26 = arith.constant 0.000000e+00 : f32
      %38 = vector.broadcast %cst_26 : f32 to vector<1x16xf32>
      %39 = arith.cmpf ogt, %24, %38 : vector<1x16xf32>
      %cst_27 = arith.constant -1.000000e+30 : f32
      %40 = vector.shape_cast %39 : vector<1x16xi1> to vector<1x16xi1>
      %41 = vector.broadcast %40 : vector<1x16xi1> to vector<8x16xi1>
      %42 = vector.broadcast %cst_27 : f32 to vector<8x16xf32>
      %43 = arith.select %41, %37, %42 : vector<8x16xi1>, vector<8x16xf32>
      %c0_28 = arith.constant 0 : index
      %c0_29 = arith.constant 0 : index
      %44 = vector.load %arg17[%c0_28, %c0_29] : memref<8x1xf32, #tpu.memory_space<vmem>>, vector<8x1xf32>
      %cst_30 = arith.constant dense<0xFF800000> : vector<8xf32>
      %45 = vector.multi_reduction <maximumf>, %43, %cst_30 [1] : vector<8x16xf32> to vector<8xf32>
      %46 = vector.shape_cast %45 : vector<8xf32> to vector<8x1xf32>
      %47 = arith.maximumf %44, %46 : vector<8x1xf32>
      %48 = arith.subf %44, %47 : vector<8x1xf32>
      %49 = math.exp %48 : vector<8x1xf32>
      %50 = vector.broadcast %47 : vector<8x1xf32> to vector<8x16xf32>
      %51 = arith.subf %43, %50 : vector<8x16xf32>
      %52 = math.exp %51 : vector<8x16xf32>
      %53 = vector.broadcast %24 : vector<1x16xf32> to vector<8x16xf32>
      %54 = arith.mulf %52, %53 : vector<8x16xf32>
      %c0_31 = arith.constant 0 : index
      %c0_32 = arith.constant 0 : index
      %55 = vector.load %arg15[%c0_31, %c0_32] : memref<8x1xf32, #tpu.memory_space<vmem>>, vector<8x1xf32>
      %56 = vector.broadcast %55 : vector<8x1xf32> to vector<8x16xf32>
      %57 = arith.subf %22, %56 : vector<8x16xf32>
      %58 = arith.mulf %54, %57 : vector<8x16xf32>
      %c0_33 = arith.constant 0 : index
      %c0_34 = arith.constant 0 : index
      %59 = vector.load %arg18[%c0_33, %c0_34] : memref<8x1xf32, #tpu.memory_space<vmem>>, vector<8x1xf32>
      %60 = arith.mulf %49, %59 : vector<8x1xf32>
      %cst_35 = arith.constant dense<0.000000e+00> : vector<8xf32>
      %61 = vector.multi_reduction <add>, %54, %cst_35 [1] : vector<8x16xf32> to vector<8xf32>
      %62 = vector.shape_cast %61 : vector<8xf32> to vector<8x1xf32>
      %63 = arith.addf %60, %62 : vector<8x1xf32>
      %c0_36 = arith.constant 0 : index
      %c0_37 = arith.constant 0 : index
      %64 = vector.load %arg18[%c0_36, %c0_37] : memref<8x1xf32, #tpu.memory_space<vmem>>, vector<8x1xf32>
      tpu.vector_store %arg18[%c0_36, %c0_37], %63 {strides = array<i32>} : memref<8x1xf32, #tpu.memory_space<vmem>>, vector<8x1xf32>,
      %c0_38 = arith.constant 0 : index
      %c0_39 = arith.constant 0 : index
      %65 = vector.load %arg19[%c0_38, %c0_39] : memref<8x1xf32, #tpu.memory_space<vmem>>, vector<8x1xf32>
      %66 = arith.mulf %49, %65 : vector<8x1xf32>
      %cst_40 = arith.constant dense<0.000000e+00> : vector<8xf32>
      %67 = vector.multi_reduction <add>, %58, %cst_40 [1] : vector<8x16xf32> to vector<8xf32>
      %68 = vector.shape_cast %67 : vector<8xf32> to vector<8x1xf32>
      %69 = arith.addf %66, %68 : vector<8x1xf32>
      %c0_41 = arith.constant 0 : index
      %c0_42 = arith.constant 0 : index
      %70 = vector.load %arg19[%c0_41, %c0_42] : memref<8x1xf32, #tpu.memory_space<vmem>>, vector<8x1xf32>
      tpu.vector_store %arg19[%c0_41, %c0_42], %69 {strides = array<i32>} : memref<8x1xf32, #tpu.memory_space<vmem>>, vector<8x1xf32>,
      %c0_43 = arith.constant 0 : index
      %c0_44 = arith.constant 0 : index
      %71 = vector.load %arg20[%c0_43, %c0_44] : memref<8x1xf32, #tpu.memory_space<vmem>>, vector<8x1xf32>
      %72 = arith.mulf %49, %71 : vector<8x1xf32>
      %73 = arith.mulf %58, %57 : vector<8x16xf32>
      %cst_45 = arith.constant dense<0.000000e+00> : vector<8xf32>
      %74 = vector.multi_reduction <add>, %73, %cst_45 [1] : vector<8x16xf32> to vector<8xf32>
      %75 = vector.shape_cast %74 : vector<8xf32> to vector<8x1xf32>
      %76 = arith.addf %72, %75 : vector<8x1xf32>
      %c0_46 = arith.constant 0 : index
      %c0_47 = arith.constant 0 : index
      %77 = vector.load %arg20[%c0_46, %c0_47] : memref<8x1xf32, #tpu.memory_space<vmem>>, vector<8x1xf32>
      tpu.vector_store %arg20[%c0_46, %c0_47], %76 {strides = array<i32>} : memref<8x1xf32, #tpu.memory_space<vmem>>, vector<8x1xf32>,
      %c0_48 = arith.constant 0 : index
      %c0_49 = arith.constant 0 : index
      %78 = vector.load %arg17[%c0_48, %c0_49] : memref<8x1xf32, #tpu.memory_space<vmem>>, vector<8x1xf32>
      tpu.vector_store %arg17[%c0_48, %c0_49], %47 {strides = array<i32>} : memref<8x1xf32, #tpu.memory_space<vmem>>, vector<8x1xf32>,
    } else {
    }
    %c1_i32_8 = arith.constant 1 : i32
    %16 = arith.cmpi eq, %arg1, %c1_i32_8 : i32
    %c0_i32_9 = arith.constant 0 : i32
    %17 = arith.cmpi eq, %arg2, %c0_i32_9 : i32
    %18 = arith.andi %16, %17 : i1
    %19 = arith.extui %18 : i1 to i32
    %c0_i32_10 = arith.constant 0 : i32
    %20 = arith.cmpi ne, %19, %c0_i32_10 : i32
    scf.if %20 {
      %c0 = arith.constant 0 : index
      %c0_11 = arith.constant 0 : index
      %21 = vector.load %arg18[%c0, %c0_11] : memref<8x1xf32, #tpu.memory_space<vmem>>, vector<8x1xf32>
      %cst = arith.constant 1.000000e-30 : f32
      %22 = vector.broadcast %cst : f32 to vector<8x1xf32>
      %23 = arith.maximumf %21, %22 : vector<8x1xf32>
      %cst_12 = arith.constant 1.000000e+00 : f32
      %24 = vector.broadcast %cst_12 : f32 to vector<8x1xf32>
      %25 = arith.divf %24, %23 : vector<8x1xf32>
      %c0_13 = arith.constant 0 : index
      %c0_14 = arith.constant 0 : index
      %26 = vector.load %arg19[%c0_13, %c0_14] : memref<8x1xf32, #tpu.memory_space<vmem>>, vector<8x1xf32>
      %27 = arith.mulf %26, %25 : vector<8x1xf32>
      %c0_15 = arith.constant 0 : index
      %c0_16 = arith.constant 0 : index
      %28 = vector.load %arg15[%c0_15, %c0_16] : memref<8x1xf32, #tpu.memory_space<vmem>>, vector<8x1xf32>
      %29 = arith.addf %27, %28 : vector<8x1xf32>
      %c0_17 = arith.constant 0 : index
      %c0_18 = arith.constant 0 : index
      %30 = vector.load %arg20[%c0_17, %c0_18] : memref<8x1xf32, #tpu.memory_space<vmem>>, vector<8x1xf32>
      %31 = arith.mulf %30, %25 : vector<8x1xf32>
      %32 = arith.mulf %27, %27 : vector<8x1xf32>
      %33 = arith.subf %31, %32 : vector<8x1xf32>
      %cst_19 = arith.constant 9.99999996E-13 : f32
      %34 = vector.broadcast %cst_19 : f32 to vector<8x1xf32>
      %35 = arith.maximumf %33, %34 : vector<8x1xf32>
      %36 = math.sqrt %35 : vector<8x1xf32>
      %37 = tpu.concatenate %29, %36 in 1 : vector<8x1xf32>, vector<8x1xf32> -> vector<8x2xf32>
      %38 = tpu.transpose %37, [1, 0] : vector<8x2xf32> -> vector<2x8xf32>
      %c0_20 = arith.constant 0 : index
      %c0_21 = arith.constant 0 : index
      %c0_22 = arith.constant 0 : index
      %39 = vector.load %arg11[%c0_20, %c0_21, %c0_22] : memref<1x2x8xf32, #tpu.memory_space<vmem>>, vector<1x2x8xf32>
      %40 = vector.shape_cast %39 : vector<1x2x8xf32> to vector<2x8xf32>
      %41 = vector.shape_cast %38 : vector<2x8xf32> to vector<1x2x8xf32>
      tpu.vector_store %arg11[%c0_20, %c0_21, %c0_22], %41 {strides = array<i32>} : memref<1x2x8xf32, #tpu.memory_space<vmem>>, vector<1x2x8xf32>,
    } else {
    }
    return
  }
  func.func @transform_0(%arg0: i32, %arg1: i32, %arg2: i32) -> (i32, i32, i32) {
    %c0_i32 = arith.constant 0 : i32
    %c0_i32_0 = arith.constant 0 : i32
    return %arg0, %c0_i32, %arg2 : i32, i32, i32
  }
  func.func @transform_1(%arg0: i32, %arg1: i32, %arg2: i32) -> (i32, i32, i32) {
    %c0_i32 = arith.constant 0 : i32
    %c0_i32_0 = arith.constant 0 : i32
    return %arg0, %c0_i32, %arg2 : i32, i32, i32
  }
  func.func @transform_2(%arg0: i32, %arg1: i32, %arg2: i32) -> (i32, i32) {
    %c0_i32 = arith.constant 0 : i32
    %c0_i32_0 = arith.constant 0 : i32
    %c0_i32_1 = arith.constant 0 : i32
    return %c0_i32, %c0_i32_0 : i32, i32
  }
  func.func @transform_3(%arg0: i32, %arg1: i32, %arg2: i32) -> (i32, i32) {
    %c0_i32 = arith.constant 0 : i32
    %c0_i32_0 = arith.constant 0 : i32
    %c0_i32_1 = arith.constant 0 : i32
    return %c0_i32, %c0_i32_0 : i32, i32
  }
  func.func @transform_4(%arg0: i32, %arg1: i32, %arg2: i32) -> (i32, i32) {
    %c0_i32 = arith.constant 0 : i32
    %c0_i32_0 = arith.constant 0 : i32
    %c0_i32_1 = arith.constant 0 : i32
    return %c0_i32, %c0_i32_0 : i32, i32
  }
  func.func @transform_5(%arg0: i32, %arg1: i32, %arg2: i32) -> (i32, i32) {
    %c0_i32 = arith.constant 0 : i32
    %c0_i32_0 = arith.constant 0 : i32
    %c0_i32_1 = arith.constant 0 : i32
    return %c0_i32, %c0_i32_0 : i32, i32
  }
  func.func @transform_6(%arg0: i32, %arg1: i32, %arg2: i32) -> (i32, i32) {
    %c0_i32 = arith.constant 0 : i32
    %c0_i32_0 = arith.constant 0 : i32
    %c0_i32_1 = arith.constant 0 : i32
    return %c0_i32, %c0_i32_0 : i32, i32
  }
  func.func @transform_7(%arg0: i32, %arg1: i32, %arg2: i32) -> (i32, i32) {
    %c0_i32 = arith.constant 0 : i32
    %c0_i32_0 = arith.constant 0 : i32
    %c0_i32_1 = arith.constant 0 : i32
    return %c0_i32, %c0_i32_0 : i32, i32
  }
  func.func @transform_8(%arg0: i32, %arg1: i32, %arg2: i32) -> (i32, i32, i32) {
    %c0_i32 = arith.constant 0 : i32
    %c0_i32_0 = arith.constant 0 : i32
    %c0_i32_1 = arith.constant 0 : i32
    return %arg0, %c0_i32, %c0_i32_0 : i32, i32, i32
  }
}

</mosaic_0001>

<bundles_post_ra>
// kernel: attentive_statistics_pooling.1
= control target key start
LH: loop header
LB: loop body
LE: loop exit
PB: predicated region body
PF: predicated region fallthrough
CT: control target
= control target key end

     0   :  { %s1078_s27 = smov 0   ;;  %s1080_s28 = smov 0   ;;  %s1245_s0 = inlined_call_operand.vmem [shape: f32[4,8,16], index: 0, kind: input, shape index: {}]   ;;  %s1246_s1 = inlined_call_operand.vmem [shape: f32[4,1,16], index: 1, kind: input, shape index: {}]   ;;  %s1247_s2 = inlined_call_operand.vmem [shape: f32[32,8], index: 2, kind: input, shape index: {}]   ;;  %s1248_s3 = inlined_call_operand.vmem [shape: f32[32,8], index: 3, kind: input, shape index: {}]   ;;  %s1249_s4 = inlined_call_operand.vmem [shape: f32[32,8], index: 4, kind: input, shape index: {}]   ;;  %s1250_s5 = inlined_call_operand.vmem [shape: f32[32,1], index: 5, kind: input, shape index: {}]   ;;  %s1251_s6 = inlined_call_operand.vmem [shape: f32[8,32], index: 6, kind: input, shape index: {}]   ;;  %s1252_s7 = inlined_call_operand.vmem [shape: f32[8,1], index: 7, kind: input, shape index: {}]   ;;  %s1253_s8 = inlined_call_operand.vmem [shape: f32[4,2,8], index: 8, kind: output, shape index: {}]  }
   0x1   :  { %s1082_s29 = smov 0   ;;  %s1084_s30 = smov 0  }
   0x2   :  { %s1086_s9 = smov 0  }
   0x3 LB: > { %s33_s10 = sadd.s32 1, %s1018_s29  ;;  %s37_s11 = sadd.s32 1, %s1022_s30  ;;  %s1026_s9 = sphi %s1086_s9, %s18_s9   ;;  %s1022_s30 = sphi %s1084_s30, %s1257_s30   ;;  %s1018_s29 = sphi %s1082_s29, %s1256_s29   ;;  %s1014_s28 = sphi %s1080_s28, %s1255_s28   ;;  %s1010_s27 = sphi %s1078_s27, %s1254_s27  }
   0x4   : > { %p35_p0 = scmp.ge.s32.totalorder %s33_s10, 2  ;;  %p890_p1 = scmp.ge.s32.totalorder %s1026_s9, 1 }
   0x5   : > { %p298_p2 = scmp.lt.s32.totalorder %s1026_s9, 9 }
   0x6   : > { %s1259_s10 = smov (%p35_p0, %s33_s10), 0  ;;  %s1261_s11 = smov (!%p35_p0, %s37_s11), %s1022_s30 }
   0x7   : > { %p299_p3 = pnand %p890_p1, %p298_p2  ;;  %p39_p4 = scmp.ge.s32.totalorder %s1261_s11, 4 }
   0x8   : > { %p339_p5 = scmp.lt.s32.totalorder (!%p299_p3), %s1014_s28, 3  ;;  %p356_p6 = scmp.eq.s32.totalorder (!%p299_p3), %s1010_s27, 0 }
   0x9   : > { %s1263_s11 = smov (%p39_p4, %s1261_s11), 0  ;;  %302 = sbr.rel (%p299_p3) target bundleno = 1354 (0x54a), region = 52 }
   0xe   : > { %s1265_s28 = smov (!%p339_p5, %s1014_s28), 3  ;;  %361 = sbr.rel (!%p356_p6) target bundleno = 19 (0x13), region = 56  ;;  %vm362_vm0 = vcmask (%p356_p6), 7168   ;;  %vm365_vm1 = vcmask (%p356_p6), 0   ;;  %v1028_v0 = vmov (%p356_p6), 0.0  }
   0xf   : > { %s891_s12 = sshll.u32 %s1265_s28, 3  ;;  %s1114_s15 = scalar_lea.vmem %s1246_s1, %s1265_s28  ;;  %363 = vst.msk [vmem:[#allocation2] sm:$0xff] (%p356_p6), %vm362_vm0, %v1028_v0 }
  0x10   : > { %s1119_s18 = scalar_lea.vmem %s1245_s0, %s891_s12  ;;  %s892_s19 = sshll.u32 %s1265_s28, 1  ;;  %364 = vst.msk [vmem:[#allocation3] sm:$0xff] (%p356_p6), %vm362_vm0, %v1028_v0 }
  0x11   : > { %s1124_s22 = scalar_lea.vmem %s1253_s8, %s892_s19  ;;  %366 = vst.msk [vmem:[#allocation4] sm:$0x1] (%p356_p6), %vm365_vm1, %v1028_v0 }
  0x13 PF: > { %p894_p7 = scmp.ne.s32.totalorder %s1010_s27, 0 }
  0x15   : > { %369 = sbr.rel (%p894_p7) target bundleno = 159 (0x9f), region = 60 }
  0x1a   : > { %v370_v1 = vld [vmem:[%s1119_s18] sm:$0xff]  ;;  %vm377_vm2 = vcmask 130048   ;;  %vm392_vm3 = vcmask 122880   ;;  %v391_v9 = vld [vmem:[#allocation4] sm:$0x1]  ;;  %vm397_vm4 = vcmask 0  }
  0x1b   : > { %v371_v2 = vld [vmem:[%s1114_s15] sm:$0x1]  ;;  %vm382_vm5 = vcmask 7168   ;;  %v384_v15 = vld [vmem:[#allocation3] sm:$0xff] }
  0x1c   : > { %v964_v3 = vld [vmem:[%s1114_s15] ss:$0 sm:$0xff]  ;;  %v393_v5 = vsel %vm392_vm3, %v371_v2, 0.0 }
  0x1d   : > { %v375_v4 = vmul.f32 %v964_v3, %v370_v1  ;;  %394 = vadd.xlane.f32.xlu1 %v393_v5  ;;  %v376_v10 = vld [vmem:[#allocation2] sm:$0xff] }
  0x1f   : > { %v378_v6 = vsel %vm377_vm2, %v375_v4, 0.0  ;;  %v385_v7 = vmul.f32 %v375_v4, %v370_v1 }
  0x20   : > { %379 = vadd.xlane.f32.xlu0 %v378_v6 }
  0x21   : > { %v386_v8 = vsel %vm377_vm2, %v385_v7, 0.0 }
  0x28   : > { %387 = vadd.xlane.f32.xlu0 %v386_v8 }
  0x90   : > { %v395_v11 = vpop.xlane.xlu1 %394 }
  0x91   : > { %v396_v12 = vadd.f32 %v395_v11, %v391_v9 }
  0x93   : > { %v380_v13 = vpop.xlane.xlu0 %379  ;;  %398 = vst.msk [vmem:[#allocation4] sm:$0x1] %vm397_vm4, %v396_v12 }
  0x94   : > { %v381_v14 = vadd.f32 %v380_v13, %v376_v10 }
  0x96   : > { %383 = vst.msk [vmem:[#allocation2] sm:$0xff] %vm382_vm5, %v381_v14 }
  0x9b   : > { %v388_v16 = vpop.xlane.xlu0 %387 }
  0x9c   : > { %v389_v17 = vadd.f32 %v388_v16, %v384_v15 }
  0x9e   : > { %390 = vst.msk [vmem:[#allocation3] sm:$0xff] %vm382_vm5, %v389_v17 }
  0x9f PF: > { %400 = sbr.rel (!%p356_p6) target bundleno = 356 (0x164), region = 64  ;;  %v401_v18 = vld [vmem:[#allocation4] sm:$0x1] (%p356_p6)  ;;  %v418_v30 = vld [vmem:[#allocation2] sm:$0xff] (%p356_p6)  ;;  %vm450_vm10 = vcmask (%p356_p6), 64512   ;;  %v445_v40 = vld [vmem:[%s1248_s3 + $0x18] sm:$0xff] (%p356_p6) }
  0xa0   : > { %v402_v19 = vmax.f32 (%p356_p6), %v401_v18, 1.0  ;;  %v444_v35 = vld [vmem:[%s1248_s3 + $0x10] sm:$0xff] (%p356_p6)  ;;  %v442_v36 = vld [vmem:[%s1248_s3] sm:$0xff] (%p356_p6)  ;;  %v443_v41 = vld [vmem:[%s1248_s3 + $0x8] sm:$0xff] (%p356_p6)  ;;  %vm440_vm13 = vcmask (%p356_p6), 7168   ;;  %v1030_v57 = vmov (%p356_p6), 0.0  }
  0xa1   : > { %v448_v51 = vld [vmem:[%s1249_s4 + $0x10] sm:$0xff] (%p356_p6)  ;;  %v446_v52 = vld [vmem:[%s1249_s4] sm:$0xff] (%p356_p6)  ;;  %v449_v54 = vld [vmem:[%s1249_s4 + $0x18] sm:$0xff] (%p356_p6)  ;;  %v1029_v56 = vmov (%p356_p6), -1e+30   ;;  %546 = vst.msk [vmem:[#allocation8] sm:$0xff] (%p356_p6), %vm440_vm13, %v1030_v57 }
  0xa2   : > { %965 = vrcp.f32 (%p356_p6), %v402_v19  ;;  %v414_v22 = vand.u32 (%p356_p6), 2147483648, %v402_v19  ;;  %vm408_vm6 = vweird.f32 (%p356_p6), %v402_v19  ;;  %v412_v24 = vand.u32 (%p356_p6), 2147483647, %v402_v19  ;;  %v447_v55 = vld [vmem:[%s1249_s4 + $0x8] sm:$0xff] (%p356_p6)  ;;  %545 = vst.msk [vmem:[#allocation7] sm:$0xff] (%p356_p6), %vm440_vm13, %v1029_v56  ;;  %v533_v60 = vld [vmem:[%s1250_s5] sm:$0xff] (%p356_p6) }
  0xa3   : > { %547 = vst.msk [vmem:[#allocation9] sm:$0xff] (%p356_p6), %vm440_vm13, %v1030_v57  ;;  %v535_v1 = vld [vmem:[%s1250_s5 + $0x10] sm:$0xff] (%p356_p6)  ;;  %v534_v5 = vld [vmem:[%s1250_s5 + $0x8] sm:$0xff] (%p356_p6)  ;;  %v536_v11 = vld [vmem:[%s1250_s5 + $0x18] sm:$0xff] (%p356_p6) }
  0xa4   : > { %v415_v26 = vor.u32 1.1754944e-38, %v414_v22  ;;  %vm413_vm9 = vcmp.eq.f32.partialorder %v412_v24, 8.507059e+37  ;;  %548 = vst.msk [vmem:[#allocation10] sm:$0xff] %vm440_vm13, %v1030_v57 }
  0xa5   : > { %v423_v31 = vld [vmem:[#allocation3] sm:$0xff] }
  0xa8   : > { %v966_v20 = vpop.eup %965 }
  0xa9   : > { %v404_v21 = vmul.f32 %v966_v20, %v402_v19  ;;  %vm409_vm7 = vweird.f32 %v966_v20 }
  0xaa   : > { %vm410_vm8 = vmor %vm408_vm6, %vm409_vm7 }
  0xab   : > { %v405_v23 = vsub.f32 1.0, %v404_v21 }
  0xad   : > { %v406_v25 = vmul.f32 %v966_v20, %v405_v23 }
  0xaf   : > { %v407_v27 = vadd.f32 %v966_v20, %v406_v25 }
  0xb1   : > { %v411_v28 = vsel %vm410_vm8, %v966_v20, %v407_v27 }
  0xb2   : > { %v416_v29 = vsel %vm413_vm9, %v415_v26, %v411_v28 }
  0xb3   : > { %v420_v32 = vperm.slane %v416_v29, 0 }
  0xb5   : > { %v422_v33 = vmul.f32 %v420_v32, %v418_v30  ;;  %v424_v34 = vmul.f32 %v423_v31, %v420_v32 }
  0xb7   : > { %v425_v37 = vmul.f32 %v422_v33, %v422_v33  ;;  %915 = vmatpush.msra.mxu3 %v422_v33  ;;  %519 = vmatpush.msra.mxu1 %v422_v33  ;;  %441 = vst.msk [vmem:[#allocation5] sm:$0xff] %vm440_vm13, %v422_v33 }
  0xb8   : > { %901 = vmatmul.msk.f32.vlgmr.msra.gmra.mxu3 %vm450_vm10, %v444_v35  ;;  %899 = vmatmul.msk.f32.vlgmr.msra.gmra.mxu1 %vm450_vm10, %v442_v36 }
  0xb9   : > { %v426_v38 = vsub.f32 %v424_v34, %v425_v37 }
  0xbb   : > { %v427_v39 = vmax.f32 %v426_v38, 1e-12 }
  0xbd   : > { %967 = vrsqrt.f32 %v427_v39  ;;  %vm435_vm11 = vcmp.eq.f32.partialorder %v427_v39, inf  ;;  %v438_v48 = vand.u32 2147483648, %v427_v39  ;;  %vm437_vm12 = vcmp.eq.f32.partialorder %v427_v39, 0.0 }
  0xc0   : > { %902 = vmatmul.msk.f32.gmra.mxu3 %vm450_vm10, %v445_v40  ;;  %900 = vmatmul.msk.f32.gmra.mxu1 %vm450_vm10, %v443_v41 }
  0xc3   : > { %v968_v42 = vpop.eup %967 }
  0xc4   : > { %v429_v43 = vmul.f32 %v968_v42, %v427_v39 }
  0xc6   : > { %v430_v44 = vmul.f32 %v968_v42, %v429_v43 }
  0xc8   : > { %v431_v45 = vmul.f32 0.5, %v430_v44 }
  0xca   : > { %v432_v46 = vsub.f32 1.5, %v431_v45 }
  0xcc   : > { %v433_v47 = vmul.f32 %v968_v42, %v432_v46 }
  0xce   : > { %v434_v49 = vmul.f32 %v433_v47, %v427_v39 }
  0xd0   : > { %v436_v50 = vsel %vm435_vm11, %v427_v39, %v434_v49 }
  0xd1   : > { %v439_v53 = vsel %vm437_vm12, %v438_v48, %v436_v50 }
  0xd2   : > { %914 = vmatpush.msra.mxu2 %v439_v53  ;;  %478 = vmatpush.msra.mxu0 %v439_v53 }
  0xd3   : > { %897 = vmatmul.msk.f32.vlgmr.msra.gmra.mxu2 %vm450_vm10, %v448_v51  ;;  %895 = vmatmul.msk.f32.vlgmr.msra.gmra.mxu0 %vm450_vm10, %v446_v52 }
  0xdb   : > { %898 = vmatmul.msk.f32.gmra.mxu2 %vm450_vm10, %v449_v54  ;;  %896 = vmatmul.msk.f32.gmra.mxu0 %vm450_vm10, %v447_v55 }
 0x135   : > { %v521_v58 = vpop.f32.mrf.mxu1 }
 0x13b   : > { %v527_v62 = vpop.f32.mrf.mxu3 }
 0x13d   : > { %v524_v2 = vpop.f32.mrf.mxu1 }
 0x143   : > { %v530_v9 = vpop.f32.mrf.mxu3 }
 0x150   : > { %v480_v59 = vpop.f32.mrf.mxu0 }
 0x151   : > { %v522_v61 = vadd.f32 %v521_v58, %v480_v59 }
 0x153   : > { %v537_v63 = vadd.f32 %v533_v60, %v522_v61 }
 0x155   : > { %541 = vst.msk [vmem:[#allocation6] sm:$0xff] %vm440_vm13, %v537_v63 }
 0x156   : > { %v486_v0 = vpop.f32.mrf.mxu2 }
 0x157   : > { %v528_v3 = vadd.f32 %v527_v62, %v486_v0 }
 0x158   : > { %v483_v4 = vpop.f32.mrf.mxu0 }
 0x159   : > { %v539_v6 = vadd.f32 %v535_v1, %v528_v3  ;;  %v525_v7 = vadd.f32 %v524_v2, %v483_v4 }
 0x15b   : > { %543 = vst.msk [vmem:[#allocation6 + $0x10] sm:$0xff] %vm440_vm13, %v539_v6  ;;  %v538_v8 = vadd.f32 %v534_v5, %v525_v7 }
 0x15d   : > { %542 = vst.msk [vmem:[#allocation6 + $0x8] sm:$0xff] %vm440_vm13, %v538_v8 }
 0x15e   : > { %v489_v10 = vpop.f32.mrf.mxu2 }
 0x15f   : > { %v531_v12 = vadd.f32 %v530_v9, %v489_v10 }
 0x161   : > { %v540_v13 = vadd.f32 %v536_v11, %v531_v12 }
 0x163   : > { %544 = vst.msk [vmem:[#allocation6 + $0x18] sm:$0xff] %vm440_vm13, %v540_v13 }
 0x164 PF: > { %p549_p8 = scmp.eq.s32.totalorder %s1010_s27, 1  ;;  %p903_p9 = scmp.ne.s32.totalorder %s1010_s27, 1 }
 0x166   : > { %552 = sbr.rel (%p903_p9) target bundleno = 1021 (0x3fd), region = 68 }
 0x16b   : > { %v1190_v14 = vld [vmem:[%s1119_s18] sm:$0xff]  ;;  %v556_v15 = vld [vmem:[%s1247_s2 + $0x8] sm:$0xff]  ;;  %vm583_vm14 = vcmask 64512   ;;  %v558_v16 = vld [vmem:[%s1247_s2 + $0x18] sm:$0xff]  ;;  %v1031_v19 = vmov 0   ;;  %vm640_vm15 = vcmask 261120  }
 0x16c   : > { %916 = vmatpush.msra.mxu2 %v1190_v14  ;;  %917 = vmatpush.msra.mxu3 %v1190_v14  ;;  %v560_v17 = vld [vmem:[#allocation6 + $0x8] sm:$0xff]  ;;  %v562_v18 = vld [vmem:[#allocation6 + $0x18] sm:$0xff]  ;;  %v559_v22 = vld [vmem:[#allocation6] sm:$0xff]  ;;  %vm670_vm2 = vcmask 130048   ;;  %vm704_vm3 = vcmask 7168  }
 0x16d   : > { %905 = vmatmul.msk.f32.vlgmr.msra.gmra.mxu2 %vm583_vm14, %v556_v15  ;;  %907 = vmatmul.msk.f32.vlgmr.msra.gmra.mxu3 %vm583_vm14, %v558_v16  ;;  %v555_v20 = vld [vmem:[%s1247_s2] sm:$0xff]  ;;  %v557_v21 = vld [vmem:[%s1247_s2 + $0x10] sm:$0xff] }
 0x16e   : > { %970 = vset.pattern.permute.xlu1 %v1031_v19  ;;  %969 = vset.pattern.permute.xlu0 %v1031_v19  ;;  %v561_v23 = vld [vmem:[#allocation6 + $0x10] sm:$0xff]  ;;  %v690_v24 = vld [vmem:[#allocation5] sm:$0xff]  ;;  %v634_v25 = vld [vmem:[%s1252_s7] sm:$0xff] }
 0x16f   : > { %570 = vperm.xlu1 %970, %v560_v17   ;;  %580 = vperm.xlu0 %969, %v562_v18   ;;  %v633_v45 = vld [vmem:[%s1251_s6] sm:$0xff]  ;;  %v706_v11 = vld [vmem:[#allocation9] sm:$0xff] }
 0x170   : > { %611 = vmatpush.msra.mxu0 %v1190_v14  ;;  %971 = vset.pattern.permute.xlu2 %v1031_v19  ;;  %v554_v47 = vld [vmem:[%s1114_s15] sm:$0x1]  ;;  %v698_v10 = vld [vmem:[#allocation8] sm:$0xff] }
 0x171   : > { %904 = vmatmul.msk.f32.vlgmr.msra.gmra.mxu0 %vm583_vm14, %v555_v20  ;;  %637 = vperm.xlu2 %971, %v634_v25   ;;  %vm664_vm0 = vcmp.gt.f32.partialorder %v554_v47, 0.0  ;;  %v669_v55 = vld [vmem:[#allocation7] sm:$0xff]  ;;  %v687_v62 = vperm.slane %v554_v47, 0 }
 0x172   : > { %v665_v48 = vsel %vm664_vm0, 1, %v1031_v19 }
 0x173   : > { %v666_v49 = vperm.slane %v665_v48, 0 }
 0x175   : > { %906 = vmatmul.msk.f32.gmra.mxu2 %vm583_vm14, %v557_v21  ;;  %vm667_vm1 = vcmp.eq.s32.totalorder %v666_v49, 1 }
 0x177   : > { %565 = vperm.xlu1 %970, %v559_v22   ;;  %575 = vperm.xlu0 %969, %v561_v23  }
 0x17f   : > { %693 = vperm.xlu1 %970, %v690_v24  }
 0x1cb   : > { %v638_v50 = vpop.permute.xlu2 %637 }
 0x1e1   : > { %v571_v26 = vpop.permute.xlu1 %570  ;;  %v581_v27 = vpop.permute.xlu0 %580 }
 0x1e9   : > { %v566_v33 = vpop.permute.xlu1 %565  ;;  %v576_v35 = vpop.permute.xlu0 %575 }
 0x1ee   : > { %v613_v32 = vpop.f32.mrf.mxu0 }
 0x1ef   : > { %v614_v37 = vadd.f32 %v613_v32, %v566_v33 }
 0x1f0   : > { %v616_v28 = vpop.f32.mrf.mxu2  ;;  %v622_v29 = vpop.f32.mrf.mxu3 }
 0x1f1   : > { %v623_v30 = vadd.f32 %v622_v29, %v581_v27  ;;  %v617_v34 = vadd.f32 %v616_v28, %v571_v26  ;;  %v625_v42 = vmax.f32 %v614_v37, 0.0  ;;  %v694_v63 = vpop.permute.xlu1 %693 }
 0x1f2   : > { %v696_v1 = vsub.f32 %v1190_v14, %v694_v63  ;;  %v713_v14 = vld [vmem:[#allocation10] sm:$0xff] }
 0x1f3   : > { %v628_v31 = vmax.f32 %v623_v30, 0.0  ;;  %v626_v39 = vmax.f32 %v617_v34, 0.0 }
 0x1f5   : > { %972 = vtanh.f32 %v628_v31 }
 0x1f8   : > { %v619_v36 = vpop.f32.mrf.mxu2 }
 0x1f9   : > { %v620_v38 = vadd.f32 %v619_v36, %v576_v35 }
 0x1fb   : > { %v627_v40 = vmax.f32 %v620_v38, 0.0  ;;  %v973_v41 = vpop.eup %972 }
 0x1fc   : > { %656 = vmatpush.msra.mxu1 %v973_v41 }
 0x1fd   : > { %974 = vtanh.f32 %v627_v40 }
 0x1fe   : > { %976 = vtanh.f32 %v626_v39 }
 0x1ff   : > { %978 = vtanh.f32 %v625_v42 }
 0x203   : > { %v975_v43 = vpop.eup %974 }
 0x204   : > { %657 = vmatpush.msra.mxu1 %v975_v43  ;;  %v977_v44 = vpop.eup %976 }
 0x205   : > { %v979_v46 = vpop.eup %978 }
 0x206   : > { %658 = vmatpush.msra.mxu1 %v977_v44 }
 0x208   : > { %659 = vmatpush.msra.mxu1 %v979_v46 }
 0x209   : > { %908 = vmatmul.msk.f32.vlgmr.msra.gmra.mxu1 %vm640_vm15, %v633_v45 }
 0x286   : > { %v661_v51 = vpop.f32.mrf.mxu1 }
 0x287   : > { %v662_v52 = vadd.f32 %v661_v51, %v638_v50 }
 0x289   : > { %v668_v53 = vsel %vm667_vm1, %v662_v52, -1e+30 }
 0x28a   : > { %v671_v54 = vsel %vm670_vm2, %v668_v53, -inf }
 0x28b   : > { %672 = vmax.xlane.f32.xlu2 %v671_v54 }
 0x2fe   : > { %v673_v56 = vpop.xlane.xlu2 %672 }
 0x2ff   : > { %v674_v57 = vmax.f32 %v669_v55, %v673_v56 }
 0x301   : > { %v675_v58 = vsub.f32 %v669_v55, %v674_v57  ;;  %721 = vst.msk [vmem:[#allocation7] sm:$0xff] %vm704_vm3, %v674_v57  ;;  %680 = vperm.xlu0 %969, %v674_v57  }
 0x303   : > { %v676_v8 = vmul.f32 1.442695, %v675_v58 }
 0x373   : > { %v681_v59 = vpop.permute.xlu0 %680 }
 0x374   : > { %v683_v60 = vsub.f32 %v668_v53, %v681_v59 }
 0x376   : > { %v684_v61 = vmul.f32 1.442695, %v683_v60 }
 0x378   : > { %980 = vpow2.f32 %v684_v61 }
 0x379   : > { %982 = vpow2.f32 %v676_v8 }
 0x37e   : > { %v981_v0 = vpop.eup %980 }
 0x37f   : > { %v689_v2 = vmul.f32 %v981_v0, %v687_v62  ;;  %v983_v9 = vpop.eup %982 }
 0x380   : > { %v699_v12 = vmul.f32 %v983_v9, %v698_v10  ;;  %v707_v16 = vmul.f32 %v983_v9, %v706_v11  ;;  %v714_v19 = vmul.f32 %v983_v9, %v713_v14 }
 0x381   : > { %v700_v3 = vsel %vm670_vm2, %v689_v2, 0.0  ;;  %v697_v4 = vmul.f32 %v696_v1, %v689_v2 }
 0x382   : > { %701 = vadd.xlane.f32.xlu0 %v700_v3 }
 0x383   : > { %v708_v5 = vsel %vm670_vm2, %v697_v4, 0.0  ;;  %v715_v6 = vmul.f32 %v697_v4, %v696_v1 }
 0x384   : > { %709 = vadd.xlane.f32.xlu1 %v708_v5 }
 0x385   : > { %v716_v7 = vsel %vm670_vm2, %v715_v6, 0.0 }
 0x386   : > { %717 = vadd.xlane.f32.xlu2 %v716_v7 }
 0x3f5   : > { %v702_v13 = vpop.xlane.xlu0 %701 }
 0x3f6   : > { %v703_v15 = vadd.f32 %v702_v13, %v699_v12 }
 0x3f7   : > { %v710_v17 = vpop.xlane.xlu1 %709 }
 0x3f8   : > { %705 = vst.msk [vmem:[#allocation8] sm:$0xff] %vm704_vm3, %v703_v15  ;;  %v711_v18 = vadd.f32 %v710_v17, %v707_v16 }
 0x3f9   : > { %v718_v20 = vpop.xlane.xlu2 %717 }
 0x3fa   : > { %712 = vst.msk [vmem:[#allocation9] sm:$0xff] %vm704_vm3, %v711_v18  ;;  %v719_v21 = vadd.f32 %v718_v20, %v714_v19 }
 0x3fc   : > { %720 = vst.msk [vmem:[#allocation10] sm:$0xff] %vm704_vm3, %v719_v21 }
 0x3fd PF: > { %725 = sbr.rel (!%p549_p8) target bundleno = 1354 (0x54a), region = 72  ;;  %s1032_s27 = smov (%p549_p8), 1   ;;  %v745_v51 = vld [vmem:[#allocation5] sm:$0xff] (%p549_p8)  ;;  %vm768_vm10 = vcmask (%p549_p8), 7168   ;;  %vm802_vm11 = vcmask (%p549_p8), 58368  }
 0x3ff   : > { %v726_v22 = vld [vmem:[#allocation8] sm:$0xff] (%p549_p8) }
 0x400   : > { %v727_v23 = vmax.f32 (%p549_p8), %v726_v22, 1e-30 }
 0x401   : > { %v743_v32 = vld [vmem:[#allocation9] sm:$0xff] (%p549_p8) }
 0x402   : > { %984 = vrcp.f32 %v727_v23  ;;  %v739_v26 = vand.u32 2147483648, %v727_v23  ;;  %vm733_vm4 = vweird.f32 %v727_v23  ;;  %v737_v28 = vand.u32 2147483647, %v727_v23 }
 0x403   : > { %v747_v33 = vld [vmem:[#allocation10] sm:$0xff] }
 0x404   : > { %v740_v30 = vor.u32 1.1754944e-38, %v739_v26  ;;  %vm738_vm7 = vcmp.eq.f32.partialorder %v737_v28, 8.507059e+37 }
 0x408   : > { %v985_v24 = vpop.eup %984 }
 0x409   : > { %v729_v25 = vmul.f32 %v985_v24, %v727_v23  ;;  %vm734_vm5 = vweird.f32 %v985_v24 }
 0x40a   : > { %vm735_vm6 = vmor %vm733_vm4, %vm734_vm5 }
 0x40b   : > { %v730_v27 = vsub.f32 1.0, %v729_v25 }
 0x40d   : > { %v731_v29 = vmul.f32 %v985_v24, %v730_v27 }
 0x40f   : > { %v732_v31 = vadd.f32 %v985_v24, %v731_v29 }
 0x411   : > { %v736_v34 = vsel %vm735_vm6, %v985_v24, %v732_v31 }
 0x412   : > { %v741_v35 = vsel %vm738_vm7, %v740_v30, %v736_v34 }
 0x413   : > { %v744_v36 = vmul.f32 %v743_v32, %v741_v35  ;;  %v748_v37 = vmul.f32 %v747_v33, %v741_v35 }
 0x415   : > { %v749_v38 = vmul.f32 %v744_v36, %v744_v36  ;;  %v746_v52 = vadd.f32 %v745_v51, %v744_v36 }
 0x417   : > { %v750_v39 = vsub.f32 %v748_v37, %v749_v38 }
 0x419   : > { %v751_v40 = vmax.f32 %v750_v39, 1e-12 }
 0x41b   : > { %986 = vrsqrt.f32 %v751_v40  ;;  %vm759_vm8 = vcmp.eq.f32.partialorder %v751_v40, inf  ;;  %v762_v47 = vand.u32 2147483648, %v751_v40  ;;  %vm761_vm9 = vcmp.eq.f32.partialorder %v751_v40, 0.0 }
 0x421   : > { %v987_v41 = vpop.eup %986 }
 0x422   : > { %v753_v42 = vmul.f32 %v987_v41, %v751_v40 }
 0x424   : > { %v754_v43 = vmul.f32 %v987_v41, %v753_v42 }
 0x426   : > { %v755_v44 = vmul.f32 0.5, %v754_v43 }
 0x428   : > { %v756_v45 = vsub.f32 1.5, %v755_v44 }
 0x42a   : > { %v757_v46 = vmul.f32 %v987_v41, %v756_v45 }
 0x42c   : > { %v758_v48 = vmul.f32 %v757_v46, %v751_v40 }
 0x42e   : > { %v760_v49 = vsel %vm759_vm8, %v751_v40, %v758_v48 }
 0x42f   : > { %v763_v50 = vsel %vm761_vm9, %v762_v47, %v760_v49 }
 0x430   : > { %765 = vrot.lane.b32.xlu0 %v763_v50, %s1032_s27 }
 0x4a2   : > { %v766_v53 = vpop.permute.xlu0 %765 }
 0x4a3   : > { %v769_v54 = vsel %vm768_vm10, %v746_v52, %v766_v53 }
 0x4a4   : > { %770 = vxpose.xlu0.b32.start.end [1/1] (short) (narrow) %v769_v54, 8 }
 0x548   : > { %v786_v55 = vpop.trf.xlu0 }
 0x549   : > { %803 = vst.msk [vmem:[%s1124_s22] sm:$0x3] %vm802_vm11, %v786_v55 }
 0x54a PF: > { %s18_s9 = sadd.s32 1, %s1026_s9   ;;  %s1254_s27 = smov %s1018_s29 }
 0x54b   : > { %p15_p10 = scmp.ge.s32.totalorder %s18_s9, 10   ;;  %s1255_s28 = smov %s1022_s30 }
 0x54c   : > { %s1256_s29 = smov %s1259_s10  ;;  %s1257_s30 = smov %s1263_s11 }
 0x54d   :  { %17 = sbr.rel (!%p15_p10) target bundleno = 3 (0x3), region = 105 }

</bundles_post_ra>
